<compile_context>
chip_gen: v6e
topology: v6e:2x2x1
jax: 0.10.0
libtpu: 0.0.40
codegen_flags: <defaults>
</compile_context>

<pallas_src>
import numpy as np
import jax
import jax.numpy as jnp
from jax.experimental import pallas as pl
from jax.experimental.pallas import tpu as pltpu

# ----------------------------- sizes (small, synthetic) ----------------------
EMB_DIM = 32        # emb_dim
GCN_DIM = 32        # gcn_dim (line_* layers are unused by this forward)
NUM_REL = 5
NUM_ENT = 24
BATCH   = 2
N_LAYER = 3
N_EDGES = 64        # rows of temp_neighbors_facts per layer
N_TAILS = 16        # number of tail nodes produced per layer

NREL_PAD  = 16                      # 2*NUM_REL+1 = 11 rel rows, padded
OH_K      = N_TAILS + 2 * NREL_PAD  # 48 : fused one-hot contraction width
OUT_PAD   = 128                     # lane-dense padded entity axis
BATCH_PAD = 8                       # sublane-padded batch axis of the output

# vpack row layout (per layer, 8 x EMB_DIM aligned slab)
VROW_WA = 0      # w_alpha weight as a row
VROW_BA = 1      # w_alpha bias in col 0
VROW_WF = 2      # W_final weight as a row (shared across layers)

# MXU operand dtype knob: bf16 on v6e/v7x; try jnp.float32 on v5e if profiling
# shows cast/pack work (f32 accumulation is used everywhere regardless).
MXU_DTYPE = jnp.bfloat16


# ----------------------------- Pallas kernel ---------------------------------
def _glogical_fused_kernel(w_sh_ref, rhs_const_ref, vpack_ref,
                           oh3_ref, oh_sc_ref, ent_mask_ref, sel_b_ref,
                           out_ref, rhs_scratch):
    """All N_LAYER GNN layers + final scoring in one gridless invocation."""
    n_layer = w_sh_ref.shape[0]
    emb     = w_sh_ref.shape[1]
    n_tails = oh_sc_ref.shape[1]

    hidden = jnp.zeros((n_tails, emb), jnp.float32)   # torch: hidden = zeros(...)

    for l in range(n_layer):                          # static unroll, N_LAYER tiny
        vrows  = vpack_ref[l]                         # one aligned (8, emb) load
        wa_row = vrows[VROW_WA:VROW_WA + 1, :]        # (1, emb)
        ba     = vrows[VROW_BA:VROW_BA + 1, 0:1]      # (1, 1)

        # --- fused RHS (48, 2*emb) in persistent VMEM scratch ----------------
        # rows [0,16)  : [hidden @ Ws | hidden @ W_h]        (changes per layer)
        # rows [16,32) : [rel_emd @ Wr | rel_emd @ W_h]       (packed at init)
        # rows [32,48) : [rel_emd @ Wqr + b_qr | 0]           (packed at init)
        if l == 0:
            # layer-0 hidden is identically zero (as in the torch module)
            rhs_scratch[0:n_tails, :] = jnp.zeros((n_tails, 2 * emb), MXU_DTYPE)
        else:
            h_block = jnp.dot(hidden.astype(MXU_DTYPE), w_sh_ref[l],
                              preferred_element_type=jnp.float32)   # (M, 2*emb)
            rhs_scratch[0:n_tails, :] = h_block.astype(MXU_DTYPE)
        rhs_scratch[n_tails:, :] = rhs_const_ref[l]

        # --- ONE fused (E,48)@(48,64) matmul:
        #   cols [0,emb)      = Ws(h_e) + Wr(hr) + Wqr(q_r) + b_qr   (attn pre-act)
        #   cols [emb,2*emb)  = (h_e + hr) @ W_h                     (message @ W_h)
        both = jnp.dot(oh3_ref[l], rhs_scratch[...],
                       preferred_element_type=jnp.float32)           # (E, 2*emb)

        act    = jnp.maximum(both[:, 0:emb], 0.0)                    # ReLU
        # alpha = sigmoid(w_alpha(act)) : VPU mul + lane reduce (no N=1 matmul)
        logit  = jnp.sum(act * wa_row, axis=-1, keepdims=True) + ba  # (E, 1)
        alpha  = jax.nn.sigmoid(logit)
        msg_wh = alpha * both[:, emb:2 * emb]                        # (E, emb)

        # scatter(message, tail_index, 'sum') with W_h pre-applied (alpha is a
        # per-row scalar, so folding W_h through the scatter is exact).
        # Dropout(0.1) is eval-mode identity; act is identity.
        hidden = jnp.dot(oh_sc_ref[l], msg_wh.astype(MXU_DTYPE),
                         preferred_element_type=jnp.float32)         # (M, emb)

    # --- final scoring (lane-dense padded output) -----------------------------
    # W_final is linear & bias-free, so unique + scatter_sum + W_final + indexed
    # assign == direct scatter of per-tail-node scores into (batch, entity),
    # with duplicates summed and untouched slots left at 0.
    wf_row = vpack_ref[n_layer - 1][VROW_WF:VROW_WF + 1, :]          # (1, emb)
    s_node = jnp.sum(hidden * wf_row, axis=-1, keepdims=True)        # (M, 1)
    scat_e = ent_mask_ref[...] * s_node                              # (M, 128)
    out_ref[...] = jnp.dot(sel_b_ref[...], scat_e,
                           preferred_element_type=jnp.float32)       # (8, 128)


_VMEM = pl.BlockSpec(memory_space=pltpu.MemorySpace.VMEM)


# ----------------------------- wrapper ----------------------------------------
@jax.jit
def glogical_layer_forward(w_sh, rhs_const, vpack, oh3, oh_sc, ent_mask, sel_b):
    """Fused GLogicalLayer.forward: one gridless pallas_call + a slice.

    Everything (~30 KB) fits in VMEM on all generations, so no grid is needed.
    Scale-up guidance: for real graphs add a grid over edges (tail_index /
    one-hots via scalar prefetch, VMEM accumulator with pl.when init/finalize);
    size edge blocks against v7x's 64 MiB VMEM (32 MiB scoped default) with
    double buffering, and on v5e/v6e raise vmem_limit_bytes and keep blocks
    >= 512 rows.  For multi-query workloads on v7x, add a leading 'parallel'
    grid axis over queries so the second TensorCore is used.
    """
    out = pl.pallas_call(
        _glogical_fused_kernel,
        out_shape=jax.ShapeDtypeStruct((BATCH_PAD, OUT_PAD), jnp.float32),
        in_specs=[_VMEM] * 7,
        out_specs=_VMEM,
        scratch_shapes=[pltpu.VMEM((OH_K, 2 * EMB_DIM), MXU_DTYPE)],
    )(w_sh, rhs_const, vpack, oh3, oh_sc, ent_mask, sel_b)
    return out[:BATCH, :NUM_ENT]


# ----------------------------- deterministic init -----------------------------
def init_params(key):
    def lin(k, shape, scale=0.1):
        return (scale * jax.random.normal(k, shape)).astype(jnp.float32)

    layers = []
    for i in range(N_LAYER):
        ks = jax.random.split(jax.random.fold_in(key, i), 8)
        layers.append(dict(
            rel_emd=lin(ks[0], (2 * NUM_REL + 1, EMB_DIM)),
            Ws=lin(ks[1], (EMB_DIM, EMB_DIM)),      # stored (in, out): x @ W
            Wr=lin(ks[2], (EMB_DIM, EMB_DIM)),
            Wqr=lin(ks[3], (EMB_DIM, EMB_DIM)),
            bqr=lin(ks[4], (1, EMB_DIM)),
            wa=lin(ks[5], (EMB_DIM, 1)),
            ba=lin(ks[6], (1, 1)),
            Wh=lin(ks[7], (EMB_DIM, EMB_DIM)),
        ))
    kf = jax.random.fold_in(key, 999)
    return dict(layers=layers, W_final=lin(kf, (EMB_DIM, 1)))


def pack_params(params):
    """Fold every parameter-only product at init time (one-time cost, free).

    Returns:
      w_sh      (L, D, 2D)  [Ws | Wh]                                   MXU dtype
      rhs_const (L, 32, 2D) rows 0..15 [rel@Wr | rel@Wh],
                            rows 16..31 [rel@Wqr + b_qr | 0]            MXU dtype
      vpack     (L, 8, D)   row 0 w_alpha, row 1 col0 b_alpha, row 2 W_final  f32
    """
    w_sh      = np.zeros((N_LAYER, EMB_DIM, 2 * EMB_DIM), np.float32)
    rhs_const = np.zeros((N_LAYER, 2 * NREL_PAD, 2 * EMB_DIM), np.float32)
    vpack     = np.zeros((N_LAYER, 8, EMB_DIM), np.float32)
    wf_row = np.asarray(params["W_final"])[:, 0]
    for l, p in enumerate(params["layers"]):
        Ws, Wr, Wqr, Wh = (np.asarray(p[k]) for k in ("Ws", "Wr", "Wqr", "Wh"))
        rel = np.zeros((NREL_PAD, EMB_DIM), np.float32)
        rel[:2 * NUM_REL + 1] = np.asarray(p["rel_emd"])
        w_sh[l, :, :EMB_DIM] = Ws
        w_sh[l, :, EMB_DIM:] = Wh
        rhs_const[l, :NREL_PAD, :EMB_DIM] = rel @ Wr
        rhs_const[l, :NREL_PAD, EMB_DIM:] = rel @ Wh
        # b_qr folded here: every edge selects exactly one q_rel row, so the
        # bias adds exactly once per edge (padded rows are never selected).
        rhs_const[l, NREL_PAD:, :EMB_DIM] = rel @ Wqr + np.asarray(p["bqr"])
        vpack[l, VROW_WA] = np.asarray(p["wa"])[:, 0]
        vpack[l, VROW_BA, 0] = float(np.asarray(p["ba"])[0, 0])
        vpack[l, VROW_WF] = wf_row
    return (jnp.asarray(w_sh, MXU_DTYPE),
            jnp.asarray(rhs_const, MXU_DTYPE),
            jnp.asarray(vpack, jnp.float32))


# ----------------------------- f32 numpy reference ----------------------------
def reference_forward(params, query_rel_np, layer_edges, tail_b, tail_e):
    """Direct port of the torch math (gather / scatter form), f32."""
    hidden = np.zeros((N_TAILS, EMB_DIM), np.float32)
    for l in range(N_LAYER):
        p = params["layers"][l]
        b, n, r, tail_idx = layer_edges[l]
        rel = np.zeros((NREL_PAD, EMB_DIM), np.float32)
        rel[:2 * NUM_REL + 1] = np.asarray(p["rel_emd"])
        h_e = hidden[n]
        hr = rel[r + 1]
        q_r = rel[query_rel_np + 1][b]
        pre = (h_e @ np.asarray(p["Ws"]) + hr @ np.asarray(p["Wr"])
               + q_r @ np.asarray(p["Wqr"]) + np.asarray(p["bqr"]))
        act = np.maximum(pre, 0.0)
        alpha = 1.0 / (1.0 + np.exp(-(act @ np.asarray(p["wa"]) + np.asarray(p["ba"]))))
        message = alpha * (h_e + hr)
        agg = np.zeros((N_TAILS, EMB_DIM), np.float32)
        np.add.at(agg, tail_idx, message)
        hidden = agg @ np.asarray(p["Wh"])
    s = (hidden @ np.asarray(params["W_final"]))[:, 0]
    out = np.zeros((BATCH, NUM_ENT), np.float32)
    np.add.at(out, (tail_b, tail_e), s)
    return out


# ----------------------------- main -------------------------------------------
if __name__ == "__main__":
    key = jax.random.PRNGKey(0)
    k_param, k_data = jax.random.split(key)
    params = init_params(k_param)
    w_sh, rhs_const, vpack = pack_params(params)

    # In the original forward, ent_emds / rel_emds / query_time never reach the
    # returned scores (GNNModel ignores them); query_head only drives neighbor
    # sampling.  hidden starts at zeros, exactly as in the torch module.
    # TODO(synk): nn.GRU, the h0 index_copy_, line_ent/line_rel/line_time and
    # mask_index_tensor handling are graph bookkeeping that never affects the
    # returned scores in this forward; they are not ported.
    query_rel = jax.random.randint(jax.random.fold_in(k_data, 3),
                                   (BATCH,), 0, 2 * NUM_REL)
    query_rel_np = np.asarray(query_rel)

    # TODO(synk): dataset.load_neighbors4model_1/_2 (dynamic neighbor sampling)
    # has no Pallas equivalent; deterministic synthetic neighbor facts are used.
    # All selector one-hots are precomputed here (static per graph/query,
    # outside the timed forward) in the MXU operand dtype.
    layer_edges = []
    oh3 = np.zeros((N_LAYER, N_EDGES, OH_K), np.float32)
    oh_sc = np.zeros((N_LAYER, N_TAILS, N_EDGES), np.float32)
    e_ar = np.arange(N_EDGES)
    for i in range(N_LAYER):
        kk = jax.random.fold_in(k_data, 10 + i)
        ks = jax.random.split(kk, 6)
        n_prev = BATCH if i == 0 else N_TAILS
        b = np.asarray(jax.random.randint(ks[0], (N_EDGES,), 0, BATCH))
        n = np.asarray(jax.random.randint(ks[1], (N_EDGES,), 0, n_prev))
        r = np.asarray(jax.random.randint(ks[3], (N_EDGES,), 0, 2 * NUM_REL))
        tail_idx = np.asarray(jax.random.randint(jax.random.fold_in(kk, 77),
                                                 (N_EDGES,), 0, N_TAILS))
        layer_edges.append((b, n, r, tail_idx))

        c1 = n                                                # hidden row
        c2 = N_TAILS + (r + 1)                                # rel_emd(r+1) row
        c3 = N_TAILS + NREL_PAD + (query_rel_np[b] + 1)       # rel_emd(q+1) row
        # the three column ranges must stay disjoint and in-range (review note)
        assert int(c1.max()) < N_TAILS and int(tail_idx.max()) < N_TAILS
        assert int(c2.min()) >= N_TAILS + 1 and int(c2.max()) < N_TAILS + NREL_PAD
        assert int(c3.min()) >= N_TAILS + NREL_PAD + 1 and int(c3.max()) < OH_K
        oh3[i, e_ar, c1] = 1.0
        oh3[i, e_ar, c2] = 1.0
        oh3[i, e_ar, c3] = 1.0
        oh_sc[i, tail_idx, e_ar] = 1.0

    # final tail_nodes: (batch, entity) per tail node of the last layer
    kt = jax.random.fold_in(k_data, 100)
    tail_b = np.asarray(jax.random.randint(jax.random.fold_in(kt, 0),
                                           (N_TAILS,), 0, BATCH))
    tail_e = np.asarray(jax.random.randint(jax.random.fold_in(kt, 1),
                                           (N_TAILS,), 0, NUM_ENT))
    ent_mask = np.zeros((N_TAILS, OUT_PAD), np.float32)
    ent_mask[np.arange(N_TAILS), tail_e] = 1.0
    sel_b = np.zeros((BATCH_PAD, N_TAILS), np.float32)
    sel_b[tail_b, np.arange(N_TAILS)] = 1.0

    scores_all = glogical_layer_forward(
        w_sh, rhs_const, vpack,
        jnp.asarray(oh3, MXU_DTYPE), jnp.asarray(oh_sc, MXU_DTYPE),
        jnp.asarray(ent_mask, jnp.float32), jnp.asarray(sel_b, jnp.float32))
    scores_all = jax.block_until_ready(scores_all)

    assert scores_all.shape == (BATCH, NUM_ENT)
    assert bool(jnp.all(jnp.isfinite(scores_all)))

    # correctness check vs the f32 gather/scatter reference (bf16 tolerance)
    ref = reference_forward(params, query_rel_np, layer_edges, tail_b, tail_e)
    np.testing.assert_allclose(np.asarray(scores_all), ref, rtol=5e-2, atol=5e-3)

    print("KERNEL_OK")
</pallas_src>

<mosaic_0001>
module attributes {stable_mosaic.version = 11 : i64} {
  func.func @_glogical_fused_kernel(%arg0: memref<3x32x64xbf16, #tpu.memory_space<vmem>>, %arg1: memref<3x32x64xbf16, #tpu.memory_space<vmem>>, %arg2: memref<3x8x32xf32, #tpu.memory_space<vmem>>, %arg3: memref<3x64x48xbf16, #tpu.memory_space<vmem>>, %arg4: memref<3x16x64xbf16, #tpu.memory_space<vmem>>, %arg5: memref<16x128xf32, #tpu.memory_space<vmem>>, %arg6: memref<8x16xf32, #tpu.memory_space<vmem>>, %arg7: memref<8x128xf32, #tpu.memory_space<vmem>>, %arg8: memref<48x64xbf16, #tpu.memory_space<vmem>>) attributes {dimension_semantics = [], scalar_prefetch = 0 : i64, scratch_operands = 1 : i64, tpu.core_type = #tpu.core_type<tc>} {
    %c0 = arith.constant 0 : index
    %c0_0 = arith.constant 0 : index
    %c0_1 = arith.constant 0 : index
    %0 = vector.load %arg2[%c0, %c0_0, %c0_1] : memref<3x8x32xf32, #tpu.memory_space<vmem>>, vector<1x8x32xf32>
    %1 = vector.shape_cast %0 : vector<1x8x32xf32> to vector<8x32xf32>
    %2 = vector.extract_strided_slice %1 {offsets = [0, 0], sizes = [1, 32], strides = [1, 1]} : vector<8x32xf32> to vector<1x32xf32>
    %3 = vector.extract_strided_slice %1 {offsets = [1, 0], sizes = [1, 1], strides = [1, 1]} : vector<8x32xf32> to vector<1x1xf32>
    %cst = arith.constant 0.000000e+00 : bf16
    %4 = vector.broadcast %cst : bf16 to vector<16x64xbf16>
    %c0_2 = arith.constant 0 : index
    %c0_3 = arith.constant 0 : index
    %5 = vector.load %arg8[%c0_2, %c0_3] : memref<48x64xbf16, #tpu.memory_space<vmem>>, vector<16x64xbf16>
    tpu.vector_store %arg8[%c0_2, %c0_3], %4 {strides = array<i32>} : memref<48x64xbf16, #tpu.memory_space<vmem>>, vector<16x64xbf16>,
    %c0_4 = arith.constant 0 : index
    %c0_5 = arith.constant 0 : index
    %c0_6 = arith.constant 0 : index
    %6 = vector.load %arg1[%c0_4, %c0_5, %c0_6] : memref<3x32x64xbf16, #tpu.memory_space<vmem>>, vector<1x32x64xbf16>
    %7 = vector.shape_cast %6 : vector<1x32x64xbf16> to vector<32x64xbf16>
    %c16 = arith.constant 16 : index
    %c0_7 = arith.constant 0 : index
    %8 = vector.load %arg8[%c16, %c0_7] : memref<48x64xbf16, #tpu.memory_space<vmem>>, vector<32x64xbf16>
    tpu.vector_store %arg8[%c16, %c0_7], %7 {strides = array<i32>} : memref<48x64xbf16, #tpu.memory_space<vmem>>, vector<32x64xbf16>,
    %c0_8 = arith.constant 0 : index
    %c0_9 = arith.constant 0 : index
    %c0_10 = arith.constant 0 : index
    %9 = vector.load %arg3[%c0_8, %c0_9, %c0_10] : memref<3x64x48xbf16, #tpu.memory_space<vmem>>, vector<1x64x48xbf16>
    %10 = vector.shape_cast %9 : vector<1x64x48xbf16> to vector<64x48xbf16>
    %c0_11 = arith.constant 0 : index
    %c0_12 = arith.constant 0 : index
    %11 = vector.load %arg8[%c0_11, %c0_12] : memref<48x64xbf16, #tpu.memory_space<vmem>>, vector<48x64xbf16>
    %cst_13 = arith.constant dense<0.000000e+00> : vector<64x64xf32>
    %12 = tpu.matmul %10, %11, %cst_13 {dimension_numbers = #tpu.dot_dimension_numbers<[1], [0], [0], [1], [0, 0, 1, 1], [], []>} : vector<64x48xbf16>, vector<48x64xbf16>, vector<64x64xf32> -> vector<64x64xf32>
    %13 = vector.extract_strided_slice %12 {offsets = [0, 0], sizes = [64, 32], strides = [1, 1]} : vector<64x64xf32> to vector<64x32xf32>
    %cst_14 = arith.constant 0.000000e+00 : f32
    %14 = vector.broadcast %cst_14 : f32 to vector<64x32xf32>
    %15 = arith.maximumf %13, %14 : vector<64x32xf32>
    %16 = vector.broadcast %2 : vector<1x32xf32> to vector<64x32xf32>
    %17 = arith.mulf %15, %16 : vector<64x32xf32>
    %cst_15 = arith.constant dense<0.000000e+00> : vector<64xf32>
    %18 = vector.multi_reduction <add>, %17, %cst_15 [1] : vector<64x32xf32> to vector<64xf32>
    %19 = vector.shape_cast %18 : vector<64xf32> to vector<64x1xf32>
    %20 = vector.broadcast %3 : vector<1x1xf32> to vector<64x1xf32>
    %21 = arith.addf %19, %20 : vector<64x1xf32>
    %22 = arith.negf %21 : vector<64x1xf32>
    %23 = math.exp %22 : vector<64x1xf32>
    %cst_16 = arith.constant 1.000000e+00 : f32
    %24 = vector.broadcast %cst_16 : f32 to vector<64x1xf32>
    %25 = arith.addf %24, %23 : vector<64x1xf32>
    %26 = arith.divf %24, %25 : vector<64x1xf32>
    %27 = vector.extract_strided_slice %12 {offsets = [0, 32], sizes = [64, 32], strides = [1, 1]} : vector<64x64xf32> to vector<64x32xf32>
    %28 = vector.broadcast %26 : vector<64x1xf32> to vector<64x32xf32>
    %29 = arith.mulf %28, %27 : vector<64x32xf32>
    %c0_17 = arith.constant 0 : index
    %c0_18 = arith.constant 0 : index
    %c0_19 = arith.constant 0 : index
    %30 = vector.load %arg4[%c0_17, %c0_18, %c0_19] : memref<3x16x64xbf16, #tpu.memory_space<vmem>>, vector<1x16x64xbf16>
    %31 = vector.shape_cast %30 : vector<1x16x64xbf16> to vector<16x64xbf16>
    %32 = arith.truncf %29 : vector<64x32xf32> to vector<64x32xbf16>
    %cst_20 = arith.constant dense<0.000000e+00> : vector<16x32xf32>
    %33 = tpu.matmul %31, %32, %cst_20 {dimension_numbers = #tpu.dot_dimension_numbers<[1], [0], [0], [1], [0, 0, 1, 1], [], []>} : vector<16x64xbf16>, vector<64x32xbf16>, vector<16x32xf32> -> vector<16x32xf32>
    %c1 = arith.constant 1 : index
    %c0_21 = arith.constant 0 : index
    %c0_22 = arith.constant 0 : index
    %34 = vector.load %arg2[%c1, %c0_21, %c0_22] : memref<3x8x32xf32, #tpu.memory_space<vmem>>, vector<1x8x32xf32>
    %35 = vector.shape_cast %34 : vector<1x8x32xf32> to vector<8x32xf32>
    %36 = vector.extract_strided_slice %35 {offsets = [0, 0], sizes = [1, 32], strides = [1, 1]} : vector<8x32xf32> to vector<1x32xf32>
    %37 = vector.extract_strided_slice %35 {offsets = [1, 0], sizes = [1, 1], strides = [1, 1]} : vector<8x32xf32> to vector<1x1xf32>
    %38 = arith.truncf %33 : vector<16x32xf32> to vector<16x32xbf16>
    %c1_23 = arith.constant 1 : index
    %c0_24 = arith.constant 0 : index
    %c0_25 = arith.constant 0 : index
    %39 = vector.load %arg0[%c1_23, %c0_24, %c0_25] : memref<3x32x64xbf16, #tpu.memory_space<vmem>>, vector<1x32x64xbf16>
    %40 = vector.shape_cast %39 : vector<1x32x64xbf16> to vector<32x64xbf16>
    %cst_26 = arith.constant dense<0.000000e+00> : vector<16x64xf32>
    %41 = tpu.matmul %38, %40, %cst_26 {dimension_numbers = #tpu.dot_dimension_numbers<[1], [0], [0], [1], [0, 0, 1, 1], [], []>} : vector<16x32xbf16>, vector<32x64xbf16>, vector<16x64xf32> -> vector<16x64xf32>
    %42 = arith.truncf %41 : vector<16x64xf32> to vector<16x64xbf16>
    %c0_27 = arith.constant 0 : index
    %c0_28 = arith.constant 0 : index
    %43 = vector.load %arg8[%c0_27, %c0_28] : memref<48x64xbf16, #tpu.memory_space<vmem>>, vector<16x64xbf16>
    tpu.vector_store %arg8[%c0_27, %c0_28], %42 {strides = array<i32>} : memref<48x64xbf16, #tpu.memory_space<vmem>>, vector<16x64xbf16>,
    %c1_29 = arith.constant 1 : index
    %c0_30 = arith.constant 0 : index
    %c0_31 = arith.constant 0 : index
    %44 = vector.load %arg1[%c1_29, %c0_30, %c0_31] : memref<3x32x64xbf16, #tpu.memory_space<vmem>>, vector<1x32x64xbf16>
    %45 = vector.shape_cast %44 : vector<1x32x64xbf16> to vector<32x64xbf16>
    %c16_32 = arith.constant 16 : index
    %c0_33 = arith.constant 0 : index
    %46 = vector.load %arg8[%c16_32, %c0_33] : memref<48x64xbf16, #tpu.memory_space<vmem>>, vector<32x64xbf16>
    tpu.vector_store %arg8[%c16_32, %c0_33], %45 {strides = array<i32>} : memref<48x64xbf16, #tpu.memory_space<vmem>>, vector<32x64xbf16>,
    %c1_34 = arith.constant 1 : index
    %c0_35 = arith.constant 0 : index
    %c0_36 = arith.constant 0 : index
    %47 = vector.load %arg3[%c1_34, %c0_35, %c0_36] : memref<3x64x48xbf16, #tpu.memory_space<vmem>>, vector<1x64x48xbf16>
    %48 = vector.shape_cast %47 : vector<1x64x48xbf16> to vector<64x48xbf16>
    %c0_37 = arith.constant 0 : index
    %c0_38 = arith.constant 0 : index
    %49 = vector.load %arg8[%c0_37, %c0_38] : memref<48x64xbf16, #tpu.memory_space<vmem>>, vector<48x64xbf16>
    %cst_39 = arith.constant dense<0.000000e+00> : vector<64x64xf32>
    %50 = tpu.matmul %48, %49, %cst_39 {dimension_numbers = #tpu.dot_dimension_numbers<[1], [0], [0], [1], [0, 0, 1, 1], [], []>} : vector<64x48xbf16>, vector<48x64xbf16>, vector<64x64xf32> -> vector<64x64xf32>
    %51 = vector.extract_strided_slice %50 {offsets = [0, 0], sizes = [64, 32], strides = [1, 1]} : vector<64x64xf32> to vector<64x32xf32>
    %cst_40 = arith.constant 0.000000e+00 : f32
    %52 = vector.broadcast %cst_40 : f32 to vector<64x32xf32>
    %53 = arith.maximumf %51, %52 : vector<64x32xf32>
    %54 = vector.broadcast %36 : vector<1x32xf32> to vector<64x32xf32>
    %55 = arith.mulf %53, %54 : vector<64x32xf32>
    %cst_41 = arith.constant dense<0.000000e+00> : vector<64xf32>
    %56 = vector.multi_reduction <add>, %55, %cst_41 [1] : vector<64x32xf32> to vector<64xf32>
    %57 = vector.shape_cast %56 : vector<64xf32> to vector<64x1xf32>
    %58 = vector.broadcast %37 : vector<1x1xf32> to vector<64x1xf32>
    %59 = arith.addf %57, %58 : vector<64x1xf32>
    %60 = arith.negf %59 : vector<64x1xf32>
    %61 = math.exp %60 : vector<64x1xf32>
    %cst_42 = arith.constant 1.000000e+00 : f32
    %62 = vector.broadcast %cst_42 : f32 to vector<64x1xf32>
    %63 = arith.addf %62, %61 : vector<64x1xf32>
    %64 = arith.divf %62, %63 : vector<64x1xf32>
    %65 = vector.extract_strided_slice %50 {offsets = [0, 32], sizes = [64, 32], strides = [1, 1]} : vector<64x64xf32> to vector<64x32xf32>
    %66 = vector.broadcast %64 : vector<64x1xf32> to vector<64x32xf32>
    %67 = arith.mulf %66, %65 : vector<64x32xf32>
    %c1_43 = arith.constant 1 : index
    %c0_44 = arith.constant 0 : index
    %c0_45 = arith.constant 0 : index
    %68 = vector.load %arg4[%c1_43, %c0_44, %c0_45] : memref<3x16x64xbf16, #tpu.memory_space<vmem>>, vector<1x16x64xbf16>
    %69 = vector.shape_cast %68 : vector<1x16x64xbf16> to vector<16x64xbf16>
    %70 = arith.truncf %67 : vector<64x32xf32> to vector<64x32xbf16>
    %cst_46 = arith.constant dense<0.000000e+00> : vector<16x32xf32>
    %71 = tpu.matmul %69, %70, %cst_46 {dimension_numbers = #tpu.dot_dimension_numbers<[1], [0], [0], [1], [0, 0, 1, 1], [], []>} : vector<16x64xbf16>, vector<64x32xbf16>, vector<16x32xf32> -> vector<16x32xf32>
    %c2 = arith.constant 2 : index
    %c0_47 = arith.constant 0 : index
    %c0_48 = arith.constant 0 : index
    %72 = vector.load %arg2[%c2, %c0_47, %c0_48] : memref<3x8x32xf32, #tpu.memory_space<vmem>>, vector<1x8x32xf32>
    %73 = vector.shape_cast %72 : vector<1x8x32xf32> to vector<8x32xf32>
    %74 = vector.extract_strided_slice %73 {offsets = [0, 0], sizes = [1, 32], strides = [1, 1]} : vector<8x32xf32> to vector<1x32xf32>
    %75 = vector.extract_strided_slice %73 {offsets = [1, 0], sizes = [1, 1], strides = [1, 1]} : vector<8x32xf32> to vector<1x1xf32>
    %76 = arith.truncf %71 : vector<16x32xf32> to vector<16x32xbf16>
    %c2_49 = arith.constant 2 : index
    %c0_50 = arith.constant 0 : index
    %c0_51 = arith.constant 0 : index
    %77 = vector.load %arg0[%c2_49, %c0_50, %c0_51] : memref<3x32x64xbf16, #tpu.memory_space<vmem>>, vector<1x32x64xbf16>
    %78 = vector.shape_cast %77 : vector<1x32x64xbf16> to vector<32x64xbf16>
    %cst_52 = arith.constant dense<0.000000e+00> : vector<16x64xf32>
    %79 = tpu.matmul %76, %78, %cst_52 {dimension_numbers = #tpu.dot_dimension_numbers<[1], [0], [0], [1], [0, 0, 1, 1], [], []>} : vector<16x32xbf16>, vector<32x64xbf16>, vector<16x64xf32> -> vector<16x64xf32>
    %80 = arith.truncf %79 : vector<16x64xf32> to vector<16x64xbf16>
    %c0_53 = arith.constant 0 : index
    %c0_54 = arith.constant 0 : index
    %81 = vector.load %arg8[%c0_53, %c0_54] : memref<48x64xbf16, #tpu.memory_space<vmem>>, vector<16x64xbf16>
    tpu.vector_store %arg8[%c0_53, %c0_54], %80 {strides = array<i32>} : memref<48x64xbf16, #tpu.memory_space<vmem>>, vector<16x64xbf16>,
    %c2_55 = arith.constant 2 : index
    %c0_56 = arith.constant 0 : index
    %c0_57 = arith.constant 0 : index
    %82 = vector.load %arg1[%c2_55, %c0_56, %c0_57] : memref<3x32x64xbf16, #tpu.memory_space<vmem>>, vector<1x32x64xbf16>
    %83 = vector.shape_cast %82 : vector<1x32x64xbf16> to vector<32x64xbf16>
    %c16_58 = arith.constant 16 : index
    %c0_59 = arith.constant 0 : index
    %84 = vector.load %arg8[%c16_58, %c0_59] : memref<48x64xbf16, #tpu.memory_space<vmem>>, vector<32x64xbf16>
    tpu.vector_store %arg8[%c16_58, %c0_59], %83 {strides = array<i32>} : memref<48x64xbf16, #tpu.memory_space<vmem>>, vector<32x64xbf16>,
    %c2_60 = arith.constant 2 : index
    %c0_61 = arith.constant 0 : index
    %c0_62 = arith.constant 0 : index
    %85 = vector.load %arg3[%c2_60, %c0_61, %c0_62] : memref<3x64x48xbf16, #tpu.memory_space<vmem>>, vector<1x64x48xbf16>
    %86 = vector.shape_cast %85 : vector<1x64x48xbf16> to vector<64x48xbf16>
    %c0_63 = arith.constant 0 : index
    %c0_64 = arith.constant 0 : index
    %87 = vector.load %arg8[%c0_63, %c0_64] : memref<48x64xbf16, #tpu.memory_space<vmem>>, vector<48x64xbf16>
    %cst_65 = arith.constant dense<0.000000e+00> : vector<64x64xf32>
    %88 = tpu.matmul %86, %87, %cst_65 {dimension_numbers = #tpu.dot_dimension_numbers<[1], [0], [0], [1], [0, 0, 1, 1], [], []>} : vector<64x48xbf16>, vector<48x64xbf16>, vector<64x64xf32> -> vector<64x64xf32>
    %89 = vector.extract_strided_slice %88 {offsets = [0, 0], sizes = [64, 32], strides = [1, 1]} : vector<64x64xf32> to vector<64x32xf32>
    %cst_66 = arith.constant 0.000000e+00 : f32
    %90 = vector.broadcast %cst_66 : f32 to vector<64x32xf32>
    %91 = arith.maximumf %89, %90 : vector<64x32xf32>
    %92 = vector.broadcast %74 : vector<1x32xf32> to vector<64x32xf32>
    %93 = arith.mulf %91, %92 : vector<64x32xf32>
    %cst_67 = arith.constant dense<0.000000e+00> : vector<64xf32>
    %94 = vector.multi_reduction <add>, %93, %cst_67 [1] : vector<64x32xf32> to vector<64xf32>
    %95 = vector.shape_cast %94 : vector<64xf32> to vector<64x1xf32>
    %96 = vector.broadcast %75 : vector<1x1xf32> to vector<64x1xf32>
    %97 = arith.addf %95, %96 : vector<64x1xf32>
    %98 = arith.negf %97 : vector<64x1xf32>
    %99 = math.exp %98 : vector<64x1xf32>
    %cst_68 = arith.constant 1.000000e+00 : f32
    %100 = vector.broadcast %cst_68 : f32 to vector<64x1xf32>
    %101 = arith.addf %100, %99 : vector<64x1xf32>
    %102 = arith.divf %100, %101 : vector<64x1xf32>
    %103 = vector.extract_strided_slice %88 {offsets = [0, 32], sizes = [64, 32], strides = [1, 1]} : vector<64x64xf32> to vector<64x32xf32>
    %104 = vector.broadcast %102 : vector<64x1xf32> to vector<64x32xf32>
    %105 = arith.mulf %104, %103 : vector<64x32xf32>
    %c2_69 = arith.constant 2 : index
    %c0_70 = arith.constant 0 : index
    %c0_71 = arith.constant 0 : index
    %106 = vector.load %arg4[%c2_69, %c0_70, %c0_71] : memref<3x16x64xbf16, #tpu.memory_space<vmem>>, vector<1x16x64xbf16>
    %107 = vector.shape_cast %106 : vector<1x16x64xbf16> to vector<16x64xbf16>
    %108 = arith.truncf %105 : vector<64x32xf32> to vector<64x32xbf16>
    %cst_72 = arith.constant dense<0.000000e+00> : vector<16x32xf32>
    %109 = tpu.matmul %107, %108, %cst_72 {dimension_numbers = #tpu.dot_dimension_numbers<[1], [0], [0], [1], [0, 0, 1, 1], [], []>} : vector<16x64xbf16>, vector<64x32xbf16>, vector<16x32xf32> -> vector<16x32xf32>
    %c2_73 = arith.constant 2 : index
    %c0_74 = arith.constant 0 : index
    %c0_75 = arith.constant 0 : index
    %110 = vector.load %arg2[%c2_73, %c0_74, %c0_75] : memref<3x8x32xf32, #tpu.memory_space<vmem>>, vector<1x8x32xf32>
    %111 = vector.shape_cast %110 : vector<1x8x32xf32> to vector<8x32xf32>
    %112 = vector.extract_strided_slice %111 {offsets = [2, 0], sizes = [1, 32], strides = [1, 1]} : vector<8x32xf32> to vector<1x32xf32>
    %113 = vector.broadcast %112 : vector<1x32xf32> to vector<16x32xf32>
    %114 = arith.mulf %109, %113 : vector<16x32xf32>
    %cst_76 = arith.constant dense<0.000000e+00> : vector<16xf32>
    %115 = vector.multi_reduction <add>, %114, %cst_76 [1] : vector<16x32xf32> to vector<16xf32>
    %116 = vector.shape_cast %115 : vector<16xf32> to vector<16x1xf32>
    %c0_77 = arith.constant 0 : index
    %c0_78 = arith.constant 0 : index
    %117 = vector.load %arg5[%c0_77, %c0_78] : memref<16x128xf32, #tpu.memory_space<vmem>>, vector<16x128xf32>
    %118 = vector.broadcast %116 : vector<16x1xf32> to vector<16x128xf32>
    %119 = arith.mulf %117, %118 : vector<16x128xf32>
    %c0_79 = arith.constant 0 : index
    %c0_80 = arith.constant 0 : index
    %120 = vector.load %arg6[%c0_79, %c0_80] : memref<8x16xf32, #tpu.memory_space<vmem>>, vector<8x16xf32>
    %cst_81 = arith.constant dense<0.000000e+00> : vector<8x128xf32>
    %121 = tpu.matmul %120, %119, %cst_81 {dimension_numbers = #tpu.dot_dimension_numbers<[1], [0], [0], [1], [0, 0, 1, 1], [], []>} : vector<8x16xf32>, vector<16x128xf32>, vector<8x128xf32> -> vector<8x128xf32>
    %c0_82 = arith.constant 0 : index
    %c0_83 = arith.constant 0 : index
    %122 = vector.load %arg7[%c0_82, %c0_83] : memref<8x128xf32, #tpu.memory_space<vmem>>, vector<8x128xf32>
    tpu.vector_store %arg7[%c0_82, %c0_83], %121 {strides = array<i32>} : memref<8x128xf32, #tpu.memory_space<vmem>>, vector<8x128xf32>,
    return
  }
}

</mosaic_0001>

<bundles_post_ra>
// kernel: glogical_layer_forward.1
= control target key start
LH: loop header
LB: loop body
LE: loop exit
PB: predicated region body
PF: predicated region fallthrough
CT: control target
= control target key end

     0   :  { %vm28_vm0 = vcmask 519168   ;;  %v1758_v2 = vmov 0   ;;  %vm91_vm1 = vcmask 392192   ;;  %v177_v16 = vlaneseq  ;;  %s1760_s27 = smov 96   ;;  %s2135_s1 = inlined_call_operand.vmem [shape: bf16[3,32,64], index: 1, kind: input, shape index: {}]   ;;  %s2136_s3 = inlined_call_operand.vmem [shape: bf16[3,64,48], index: 3, kind: input, shape index: {}]   ;;  %s2137_s2 = inlined_call_operand.vmem [shape: f32[3,8,32], index: 2, kind: input, shape index: {}]   ;;  %s2138_s4 = inlined_call_operand.vmem [shape: bf16[3,16,64], index: 4, kind: input, shape index: {}]   ;;  %s2139_s0 = inlined_call_operand.vmem [shape: bf16[3,32,64], index: 0, kind: input, shape index: {}]   ;;  %s2140_s5 = inlined_call_operand.vmem [shape: f32[16,128], index: 5, kind: input, shape index: {}]   ;;  %s2141_s6 = inlined_call_operand.vmem [shape: f32[8,16], index: 6, kind: input, shape index: {}]   ;;  %s2142_s7 = inlined_call_operand.vmem [shape: f32[8,128], index: 7, kind: output, shape index: {}]  }
   0x1   :  { %v33_v0 = vld [vmem:[%s2135_s1 + $0x8] sm:$0xf]  ;;  %v34_v1 = vld [vmem:[%s2135_s1 + $0xc] sm:$0xf]  ;;  %29 = vst.msk [vmem:[#allocation2] sm:$0xf] %vm28_vm0, %v1758_v2  ;;  %1632 = vset.pattern.permute.xlu0 %v1758_v2  ;;  %1633 = vset.pattern.permute.xlu1 %v1758_v2 }
   0x2   :  { %30 = vst.msk [vmem:[#allocation2 + $0x4] sm:$0xf] %vm28_vm0, %v1758_v2  ;;  %37 = vst.msk [vmem:[#allocation2 + $0x10] sm:$0xf] %vm28_vm0, %v33_v0  ;;  %v31_v3 = vld [vmem:[%s2135_s1] sm:$0xf] }
   0x3   :  { %38 = vst.msk [vmem:[#allocation2 + $0x14] sm:$0xf] %vm28_vm0, %v34_v1  ;;  %v32_v4 = vld [vmem:[%s2135_s1 + $0x4] sm:$0xf]  ;;  %35 = vst.msk [vmem:[#allocation2 + $0x8] sm:$0xf] %vm28_vm0, %v31_v3 }
   0x4   :  { %36 = vst.msk [vmem:[#allocation2 + $0xc] sm:$0xf] %vm28_vm0, %v32_v4  ;;  %v1637_v5 = vld [vmem:[%s2136_s3] sm:$0xff]   ;;  %v1398_v6 = vld [vmem:[%s2135_s1 + $0x18] sm:$0xf]  ;;  %v1638_v13 = vld [vmem:[%s2136_s3 + $0x8] sm:$0xff]  }
   0x5   :  { %v1399_v7 = vld [vmem:[%s2135_s1 + $0x1c] sm:$0xf]  ;;  %1533 = vmatprep.mubr.msk.bf16.mxu0 %vm91_vm1, %v1637_v5  ;;  %v1396_v8 = vld [vmem:[%s2135_s1 + $0x10] sm:$0xf]  ;;  %v1397_v9 = vld [vmem:[%s2135_s1 + $0x14] sm:$0xf] }
   0x6   :  { %v1639_v14 = vld [vmem:[%s2136_s3 + $0x10] sm:$0xff]   ;;  %v1640_v15 = vld [vmem:[%s2136_s3 + $0x18] sm:$0xff]   ;;  %v1854_v18 = vshrl.u32 %v177_v16, 7  ;;  %v27_v23 = vld [vmem:[%s2137_s2] sm:$0xff]  ;;  %vm189_vm2 = vcmask 261120   ;;  %vm1761_vm3 = vmmov 0  }
   0x7   :  { %vm349_vm4 = vcmask 523264   ;;  %vm1286_vm5 = vcmask 130048  }
   0x8   :  { %v1861_v21 = vsub.s32 0, %v1854_v18  ;;  %v1894_v53 = vsub.s32 1, %v1854_v18 }
   0x9   :  { %v1636_v12 = vld [vmem:[#allocation2] sm:$0xff]  }
   0xa   :  { %v1634_v10 = vld [vmem:[#allocation2 + $0x10] sm:$0xff]   ;;  %v180_v26 = vrot.slane %v27_v23, %v1861_v21  ;;  %v217_v54 = vrot.slane %v27_v23, %v1894_v53 }
   0xb   :  { %475 = vst.msk [vmem:[#allocation2 + $0x10] sm:$0xf] %vm28_vm0, %v1398_v6  ;;  %476 = vst.msk [vmem:[#allocation2 + $0x14] sm:$0xf] %vm28_vm0, %v1399_v7  ;;  %v1635_v11 = vld [vmem:[#allocation2 + $0x8] sm:$0xff]   ;;  %1527 = vmatprep.subr.bf16.mxu0 %v1634_v10 }
   0xc   :  { %473 = vst.msk [vmem:[#allocation2 + $0x8] sm:$0xf] %vm28_vm0, %v1396_v8  ;;  %474 = vst.msk [vmem:[#allocation2 + $0xc] sm:$0xf] %vm28_vm0, %v1397_v9  ;;  %1528 = vmatpush3.bf16.msra.mxu0 %v1634_v10 }
   0xd   :  { %1529 = vmatprep.subr.bf16.mxu0 %v1635_v11 }
  0x10   :  { %1530 = vmatpush3.bf16.msra.mxu0 %v1635_v11 }
  0x11   :  { %1531 = vmatprep.subr.bf16.mxu0 %v1636_v12 }
  0x14   :  { %1532 = vmatpush3.bf16.msra.mxu0 %v1636_v12 }
  0x17   :  { %1534 = vmatmul.mubr.msk.bf16.vlgmr.msra.gmra.mxu0 %vm91_vm1, %v1638_v13 }
  0x18   :  { %1537 = vmatprep.mubr.msk.bf16.mxu0 %vm91_vm1, %v1639_v14 }
  0x1f   :  { %1538 = vmatmul.mubr.msk.bf16.gmra.mxu0 %vm91_vm1, %v1640_v15 }
  0xd7   :  { %v1852_v17 = vpop.f32.mrf.mxu0 }
  0xd8   :  { %v171_v31 = vmax.f32 %v1852_v17, 0.0 }
  0xd9   :  { %v1856_v19 = vpop.f32.mrf.mxu0 }
  0xda   :  { %v169_v40 = vmax.f32 %v1856_v19, 0.0  ;;  %v183_v43 = vmul.f32 %v180_v26, %v171_v31 }
  0xdb   :  { %v1858_v20 = vpop.f32.mrf.mxu0 }
  0xdc   :  { %v172_v36 = vmax.f32 %v1858_v20, 0.0  ;;  %v196_v47 = vsel %vm189_vm2, %v183_v43, 0.0  ;;  %v181_v48 = vmul.f32 %v180_v26, %v169_v40 }
  0xdd   :  { %v1863_v22 = vpop.f32.mrf.mxu0 }
  0xde   :  { %v170_v44 = vmax.f32 %v1863_v22, 0.0  ;;  %v184_v46 = vmul.f32 %v180_v26, %v172_v36  ;;  %v190_v51 = vsel %vm189_vm2, %v181_v48, 0.0 }
  0xdf   :  { %v1868_v24 = vpop.f32.mrf.mxu0 }
  0xe0   :  { %v175_v25 = vmax.f32 %v1868_v24, 0.0  ;;  %v199_v49 = vsel %vm189_vm2, %v184_v46, 0.0  ;;  %v182_v50 = vmul.f32 %v180_v26, %v170_v44 }
  0xe1   :  { %v1872_v27 = vpop.f32.mrf.mxu0 }
  0xe2   :  { %v173_v28 = vmax.f32 %v1872_v27, 0.0  ;;  %v187_v29 = vmul.f32 %v180_v26, %v175_v25  ;;  %v193_v52 = vsel %vm189_vm2, %v182_v50, 0.0 }
  0xe3   :  { %v1875_v30 = vpop.f32.mrf.mxu0 }
  0xe4   :  { %v176_v32 = vmax.f32 %v1875_v30, 0.0  ;;  %v208_v33 = vsel %vm189_vm2, %v187_v29, 0.0  ;;  %v185_v34 = vmul.f32 %v180_v26, %v173_v28 }
  0xe5   :  { %209 = vadd.xlane.f32.xlu0 %v208_v33  ;;  %v1880_v35 = vpop.f32.mrf.mxu0 }
  0xe6   :  { %v174_v37 = vmax.f32 %v1880_v35, 0.0  ;;  %v202_v38 = vsel %vm189_vm2, %v185_v34, 0.0  ;;  %v188_v39 = vmul.f32 %v180_v26, %v176_v32 }
  0xe7   :  { %203 = vadd.xlane.f32.xlu1 %v202_v38 }
  0xe8   :  { %v211_v41 = vsel %vm189_vm2, %v188_v39, 0.0  ;;  %v186_v42 = vmul.f32 %v180_v26, %v174_v37 }
  0xe9   :  { %212 = vadd.xlane.f32.xlu0 %v211_v41 }
  0xea   :  { %v205_v45 = vsel %vm189_vm2, %v186_v42, 0.0 }
  0xeb   :  { %206 = vadd.xlane.f32.xlu1 %v205_v45 }
  0xed   :  { %197 = vadd.xlane.f32.xlu0 %v196_v47 }
  0xef   :  { %200 = vadd.xlane.f32.xlu1 %v199_v49  ;;  %v1759_v49 = vmov 0.0  }
  0xf0   :  { %1541 = vmatprep.subr.bf16.mxu1 %v1759_v49  ;;  %1549 = vmatprep.mubr.msk.bf16.mxu1 %vm1761_vm3, %v1759_v49 }
  0xf1   :  { %191 = vadd.xlane.f32.xlu0 %v190_v51 }
  0xf3   :  { %194 = vadd.xlane.f32.xlu1 %v193_v52 }
 0x16e   :  { %v210_v55 = vpop.xlane.xlu0 %209 }
 0x16f   :  { %v224_v56 = vadd.f32 %v217_v54, %v210_v55 }
 0x170   :  { %v204_v57 = vpop.xlane.xlu1 %203 }
 0x171   :  { %v1382_v58 = vmul.f32 -1.442695, %v224_v56  ;;  %v222_v62 = vadd.f32 %v217_v54, %v204_v57 }
 0x172   :  { %v213_v59 = vpop.xlane.xlu0 %212 }
 0x173   :  { %1662 = vpow2.f32 %v1382_v58  ;;  %v225_v3 = vadd.f32 %v217_v54, %v213_v59  ;;  %v1380_v4 = vmul.f32 -1.442695, %v222_v62 }
 0x174   :  { %v207_v60 = vpop.xlane.xlu1 %206 }
 0x175   :  { %v1383_v6 = vmul.f32 -1.442695, %v225_v3  ;;  %v223_v7 = vadd.f32 %v217_v54, %v207_v60 }
 0x176   :  { %v198_v61 = vpop.xlane.xlu0 %197 }
 0x177   :  { %v220_v63 = vadd.f32 %v217_v54, %v198_v61  ;;  %v1381_v12 = vmul.f32 -1.442695, %v223_v7 }
 0x178   :  { %v201_v0 = vpop.xlane.xlu1 %200 }
 0x179   :  { %v1378_v1 = vmul.f32 -1.442695, %v220_v63  ;;  %v221_v2 = vadd.f32 %v217_v54, %v201_v0 }
 0x17a   :  { %v192_v8 = vpop.xlane.xlu0 %191 }
 0x17b   :  { %1664 = vpow2.f32 %v1378_v1  ;;  %v1379_v5 = vmul.f32 -1.442695, %v221_v2  ;;  %v218_v11 = vadd.f32 %v217_v54, %v192_v8 }
 0x17c   :  { %v195_v13 = vpop.xlane.xlu1 %194 }
 0x17d   :  { %1666 = vpow2.f32 %v1379_v5  ;;  %v1376_v14 = vmul.f32 -1.442695, %v218_v11  ;;  %v219_v15 = vadd.f32 %v217_v54, %v195_v13  ;;  %v1643_v5 = vld [vmem:[%s2139_s0 + $0x10] sm:$0xff]   ;;  %v1444_v13 = vld [vmem:[%s2135_s1 + $0x2c] sm:$0xf] }
 0x17e   :  { %1668 = vpow2.f32 %v1380_v4  ;;  %v1644_v11 = vld [vmem:[#allocation2 + $0x10] sm:$0xff]  }
 0x17f   :  { %1670 = vpow2.f32 %v1383_v6  ;;  %v1377_v26 = vmul.f32 -1.442695, %v219_v15  ;;  %1561 = vmatprep.subr.bf16.mxu0 %v1644_v11  ;;  %913 = vst.msk [vmem:[#allocation2 + $0x14] sm:$0xf] %vm28_vm0, %v1444_v13  ;;  %v1441_v15 = vld [vmem:[%s2135_s1 + $0x20] sm:$0xf] }
 0x180   :  { %v1663_v9 = vpop.eup %1662  ;;  %1562 = vmatpush3.bf16.msra.mxu0 %v1644_v11 }
 0x181   :  { %v256_v10 = vadd.f32 1.0, %v1663_v9 }
 0x183   :  { %1672 = vrcp.f32 %v256_v10 }
 0x184   :  { %1674 = vpow2.f32 %v1381_v12  ;;  %v1443_v12 = vld [vmem:[%s2135_s1 + $0x28] sm:$0xf] }
 0x185   :  { %1676 = vpow2.f32 %v1376_v14  ;;  %v1645_v14 = vld [vmem:[#allocation2 + $0x8] sm:$0xff]   ;;  %912 = vst.msk [vmem:[#allocation2 + $0x10] sm:$0xf] %vm28_vm0, %v1443_v12 }
 0x186   :  { %910 = vst.msk [vmem:[#allocation2 + $0x8] sm:$0xf] %vm28_vm0, %v1441_v15  ;;  %1563 = vmatprep.subr.bf16.mxu0 %v1645_v14 }
 0x187   :  { %1564 = vmatpush3.bf16.msra.mxu0 %v1645_v14 }
 0x188   :  { %v1665_v16 = vpop.eup %1664 }
 0x189   :  { %v252_v23 = vadd.f32 1.0, %v1665_v16  ;;  %v1442_v16 = vld [vmem:[%s2135_s1 + $0x24] sm:$0xf] }
 0x18a   :  { %v1667_v25 = vpop.eup %1666  ;;  %911 = vst.msk [vmem:[#allocation2 + $0xc] sm:$0xf] %vm28_vm0, %v1442_v16 }
 0x18b   :  { %1678 = vrcp.f32 %v252_v23  ;;  %v253_v28 = vadd.f32 1.0, %v1667_v25  ;;  %v1669_v29 = vpop.eup %1668  ;;  %v1647_v23 = vld [vmem:[%s2136_s3 + $0x20] sm:$0xff]  }
 0x18c   :  { %1680 = vpow2.f32 %v1377_v26  ;;  %v1671_v31 = vpop.eup %1670  ;;  %v254_v32 = vadd.f32 1.0, %v1669_v29  ;;  %1567 = vmatprep.mubr.msk.bf16.mxu0 %vm91_vm1, %v1647_v23 }
 0x18d   :  { %1682 = vrcp.f32 %v253_v28  ;;  %v257_v34 = vadd.f32 1.0, %v1671_v31 }
 0x18e   :  { %1684 = vrcp.f32 %v254_v32 }
 0x18f   :  { %1686 = vrcp.f32 %v257_v34  ;;  %v1648_v34 = vld [vmem:[%s2136_s3 + $0x28] sm:$0xff]  }
 0x190   :  { %v1673_v33 = vpop.eup %1672 }
 0x191   :  { %306 = vperm.xlu0 %1632, %v1673_v33   ;;  %v1675_v36 = vpop.eup %1674 }
 0x192   :  { %v1677_v37 = vpop.eup %1676  ;;  %v255_v38 = vadd.f32 1.0, %v1675_v36  ;;  %v1649_v36 = vld [vmem:[%s2136_s3 + $0x30] sm:$0xff]  }
 0x193   :  { %v250_v41 = vadd.f32 1.0, %v1677_v37  ;;  %v1650_v37 = vld [vmem:[%s2136_s3 + $0x38] sm:$0xff]  }
 0x194   :  { %1688 = vrcp.f32 %v255_v38 }
 0x195   :  { %1690 = vrcp.f32 %v250_v41 }
 0x198   :  { %v1679_v39 = vpop.eup %1678 }
 0x199   :  { %286 = vperm.xlu1 %1633, %v1679_v39   ;;  %v1681_v40 = vpop.eup %1680 }
 0x19a   :  { %v1683_v42 = vpop.eup %1682  ;;  %v251_v43 = vadd.f32 1.0, %v1681_v40 }
 0x19b   :  { %v1685_v44 = vpop.eup %1684 }
 0x19c   :  { %1692 = vrcp.f32 %v251_v43  ;;  %v1687_v45 = vpop.eup %1686 }
 0x19d   :  { %291 = vperm.xlu1 %1633, %v1683_v42   ;;  %v1386_v42 = vld [vmem:[%s2137_s2 + $0x8] sm:$0xff] }
 0x1a1   :  { %296 = vperm.xlu1 %1633, %v1685_v44   ;;  %v1689_v46 = vpop.eup %1688 }
 0x1a2   :  { %v1691_v47 = vpop.eup %1690 }
 0x1a5   :  { %311 = vperm.xlu1 %1633, %v1687_v45   ;;  %v618_v45 = vrot.slane %v1386_v42, %v1861_v21 }
 0x1a9   :  { %301 = vperm.xlu1 %1633, %v1689_v46   ;;  %v1693_v48 = vpop.eup %1692 }
 0x1ad   :  { %276 = vperm.xlu1 %1633, %v1691_v47  }
 0x1b1   :  { %281 = vperm.xlu1 %1633, %v1693_v48  }
 0x20c   :  { %v307_v54 = vpop.permute.xlu0 %306 }
 0x20d   :  { %v320_v56 = vmul.f32 %v1868_v24, %v307_v54 }
 0x214   :  { %v287_v50 = vpop.permute.xlu1 %286 }
 0x215   :  { %v316_v61 = vmul.f32 %v1852_v17, %v287_v50 }
 0x218   :  { %v292_v51 = vpop.permute.xlu1 %291 }
 0x219   :  { %v317_v58 = vmul.f32 %v1858_v20, %v292_v51 }
 0x21b   :  { %v325_v24 = vpack.c.bf16 %v317_v58, %v316_v61 }
 0x21c   :  { %v297_v52 = vpop.permute.xlu1 %296 }
 0x21d   :  { %v318_v62 = vmul.f32 %v297_v52, %v1872_v27 }
 0x220   :  { %v312_v55 = vpop.permute.xlu1 %311 }
 0x221   :  { %v321_v57 = vmul.f32 %v1875_v30, %v312_v55 }
 0x223   :  { %v327_v59 = vpack.c.bf16 %v321_v57, %v320_v56 }
 0x224   :  { %v302_v60 = vpop.permute.xlu1 %301 }
 0x225   :  { %v319_v63 = vmul.f32 %v302_v60, %v1880_v35  ;;  %343 = vrot.lane.b32.xlu1 %v327_v59, %s1760_s27 }
 0x227   :  { %v326_v0 = vpack.c.bf16 %v319_v63, %v318_v62 }
 0x228   :  { %v277_v30 = vpop.permute.xlu1 %276 }
 0x229   :  { %339 = vrot.lane.b32.xlu1 %v325_v24, %s1760_s27  ;;  %341 = vrot.lane.b32.xlu0 %v326_v0, %s1760_s27  ;;  %v314_v17 = vmul.f32 %v277_v30, %v1856_v19  ;;  %v1641_v19 = vld [vmem:[%s2138_s4] sm:$0xff]  }
 0x22c   :  { %v282_v20 = vpop.permute.xlu1 %281 }
 0x22d   :  { %v315_v27 = vmul.f32 %v282_v20, %v1863_v22  ;;  %v1642_v22 = vld [vmem:[%s2139_s0 + $0x18] sm:$0xff]  }
 0x22f   :  { %v324_v35 = vpack.c.bf16 %v315_v27, %v314_v17 }
 0x231   :  { %337 = vrot.lane.b32.xlu0 %v324_v35, %s1760_s27 }
 0x297   :  { %v344_v1 = vpop.permute.xlu1 %343 }
 0x298   :  { %1542 = vmatpush3.bf16.msra.mxu1 %v344_v1 }
 0x299   :  { %1543 = vmatprep.subr.bf16.mxu1 %v1759_v49 }
 0x29b   :  { %v342_v2 = vpop.permute.xlu0 %341  ;;  %v340_v3 = vpop.permute.xlu1 %339 }
 0x29c   :  { %1544 = vmatpush3.bf16.msra.mxu1 %v342_v2 }
 0x29d   :  { %1545 = vmatprep.subr.bf16.mxu1 %v1759_v49 }
 0x2a0   :  { %1546 = vmatpush3.bf16.msra.mxu1 %v340_v3 }
 0x2a1   :  { %1547 = vmatprep.subr.bf16.mxu1 %v1759_v49 }
 0x2a3   :  { %v338_v4 = vpop.permute.xlu0 %337 }
 0x2a4   :  { %1548 = vmatpush3.bf16.msra.mxu1 %v338_v4  ;;  %v654_v4 = vrot.slane %v1386_v42, %v1894_v53 }
 0x2a5   :  { %1553 = vmatprep.subr.bf16.mxu1 %v1759_v49 }
 0x2a7   :  { %1550 = vmatmul.mubr.msk.bf16.vlgmr.msra.gmra.mxu1 %vm349_vm4, %v1641_v19 }
 0x2a8   :  { %1557 = vmatprep.mubr.msk.bf16.mxu1 %vm1761_vm3, %v1759_v49  ;;  %1554 = vmatpush3.bf16.msra.mxu1 %v1642_v22 }
 0x2a9   :  { %1555 = vmatprep.subr.bf16.mxu1 %v1759_v49 }
 0x2ac   :  { %1556 = vmatpush3.bf16.msra.mxu1 %v1643_v5 }
 0x2ad   :  { %1575 = vmatprep.subr.bf16.mxu1 %v1759_v49 }
 0x367   :  { %v387_v6 = vpop.f32.mrf.mxu1 }
 0x369   :  { %v1551_v7 = vpop.f32.mrf.mxu1 }
 0x36b   :  { %v390_v8 = vpop.f32.mrf.mxu1 }
 0x36c   :  { %v396_v9 = vpack.c.bf16 %v390_v8, %v387_v6 }
 0x36d   :  { %v1552_v10 = vpop.f32.mrf.mxu1 }
 0x36e   :  { %1558 = vmatmul.mubr.msk.bf16.vlgmr.msra.gmra.mxu1 %vm189_vm2, %v396_v9 }
 0x36f   :  { %1583 = vmatprep.mubr.msk.bf16.mxu1 %vm1761_vm3, %v1759_v49 }
 0x42e   :  { %v451_v25 = vpop.f32.mrf.mxu1 }
 0x42f   :  { %v1478_v26 = vpack.c.bf16 %v451_v25, %v451_v25 }
 0x430   :  { %v1559_v28 = vpop.f32.mrf.mxu1 }
 0x431   :  { %466 = vst.msk [vmem:[#allocation2] sm:$0xf] %vm28_vm0, %v1478_v26 }
 0x432   :  { %v454_v29 = vpop.f32.mrf.mxu1 }
 0x433   :  { %v1479_v31 = vpack.c.bf16 %v454_v29, %v454_v29 }
 0x434   :  { %v1560_v32 = vpop.f32.mrf.mxu1 }
 0x435   :  { %467 = vst.msk [vmem:[#allocation2 + $0x4] sm:$0xf] %vm28_vm0, %v1479_v31 }
 0x43c   :  { %v1646_v33 = vld [vmem:[#allocation2] sm:$0xff]  }
 0x43d   :  { %1565 = vmatprep.subr.bf16.mxu0 %v1646_v33 }
 0x43e   :  { %1566 = vmatpush3.bf16.msra.mxu0 %v1646_v33 }
 0x43f   :  { %1587 = vmatprep.subr.bf16.mxu0 %v1759_v49 }
 0x441   :  { %1568 = vmatmul.mubr.msk.bf16.vlgmr.msra.gmra.mxu0 %vm91_vm1, %v1648_v34 }
 0x442   :  { %1571 = vmatprep.mubr.msk.bf16.mxu0 %vm91_vm1, %v1649_v36 }
 0x449   :  { %1572 = vmatmul.mubr.msk.bf16.gmra.mxu0 %vm91_vm1, %v1650_v37 }
 0x44a   :  { %1591 = vmatprep.mubr.msk.bf16.mxu0 %vm1761_vm3, %v1759_v49 }
 0x501   :  { %v1970_v38 = vpop.f32.mrf.mxu0 }
 0x502   :  { %v609_v58 = vmax.f32 %v1970_v38, 0.0 }
 0x503   :  { %v1972_v39 = vpop.f32.mrf.mxu0 }
 0x504   :  { %v607_v0 = vmax.f32 %v1972_v39, 0.0  ;;  %v621_v20 = vmul.f32 %v618_v45, %v609_v58 }
 0x505   :  { %v1974_v40 = vpop.f32.mrf.mxu0 }
 0x506   :  { %v610_v55 = vmax.f32 %v1974_v40, 0.0  ;;  %v633_v35 = vsel %vm189_vm2, %v621_v20, 0.0  ;;  %v619_v1 = vmul.f32 %v618_v45, %v607_v0 }
 0x507   :  { %v1976_v41 = vpop.f32.mrf.mxu0 }
 0x508   :  { %v608_v62 = vmax.f32 %v1976_v41, 0.0  ;;  %v622_v24 = vmul.f32 %v618_v45, %v610_v55  ;;  %v627_v3 = vsel %vm189_vm2, %v619_v1, 0.0 }
 0x509   :  { %v1981_v43 = vpop.f32.mrf.mxu0 }
 0x50a   :  { %v613_v44 = vmax.f32 %v1981_v43, 0.0  ;;  %v636_v17 = vsel %vm189_vm2, %v622_v24, 0.0  ;;  %v620_v27 = vmul.f32 %v618_v45, %v608_v62 }
 0x50b   :  { %v1985_v46 = vpop.f32.mrf.mxu0 }
 0x50c   :  { %v625_v47 = vmul.f32 %v618_v45, %v613_v44  ;;  %v611_v50 = vmax.f32 %v1985_v46, 0.0  ;;  %v630_v2 = vsel %vm189_vm2, %v620_v27, 0.0 }
 0x50d   :  { %v1987_v48 = vpop.f32.mrf.mxu0 }
 0x50e   :  { %v614_v51 = vmax.f32 %v1987_v48, 0.0  ;;  %v645_v52 = vsel %vm189_vm2, %v625_v47, 0.0  ;;  %v623_v61 = vmul.f32 %v618_v45, %v611_v50 }
 0x50f   :  { %646 = vadd.xlane.f32.xlu1 %v645_v52  ;;  %v1992_v54 = vpop.f32.mrf.mxu0 }
 0x510   :  { %v612_v56 = vmax.f32 %v1992_v54, 0.0  ;;  %v626_v57 = vmul.f32 %v618_v45, %v614_v51  ;;  %v639_v30 = vsel %vm189_vm2, %v623_v61, 0.0 }
 0x512   :  { %v648_v59 = vsel %vm189_vm2, %v626_v57, 0.0  ;;  %v624_v60 = vmul.f32 %v618_v45, %v612_v56 }
 0x513   :  { %649 = vadd.xlane.f32.xlu0 %v648_v59 }
 0x514   :  { %v642_v63 = vsel %vm189_vm2, %v624_v60, 0.0 }
 0x515   :  { %643 = vadd.xlane.f32.xlu1 %v642_v63 }
 0x517   :  { %640 = vadd.xlane.f32.xlu0 %v639_v30 }
 0x519   :  { %637 = vadd.xlane.f32.xlu1 %v636_v17 }
 0x51b   :  { %634 = vadd.xlane.f32.xlu0 %v633_v35 }
 0x51d   :  { %631 = vadd.xlane.f32.xlu1 %v630_v2 }
 0x51f   :  { %628 = vadd.xlane.f32.xlu0 %v627_v3 }
 0x598   :  { %v647_v19 = vpop.xlane.xlu1 %646 }
 0x599   :  { %v661_v22 = vadd.f32 %v654_v4, %v647_v19 }
 0x59b   :  { %v1425_v5 = vmul.f32 -1.442695, %v661_v22 }
 0x59c   :  { %v650_v6 = vpop.xlane.xlu0 %649 }
 0x59d   :  { %1694 = vpow2.f32 %v1425_v5  ;;  %v662_v7 = vadd.f32 %v654_v4, %v650_v6 }
 0x59e   :  { %v644_v8 = vpop.xlane.xlu1 %643 }
 0x59f   :  { %v1426_v9 = vmul.f32 -1.442695, %v662_v7  ;;  %v660_v10 = vadd.f32 %v654_v4, %v644_v8 }
 0x5a0   :  { %v641_v11 = vpop.xlane.xlu0 %640 }
 0x5a1   :  { %1696 = vpow2.f32 %v1426_v9  ;;  %v1424_v12 = vmul.f32 -1.442695, %v660_v10  ;;  %v659_v13 = vadd.f32 %v654_v4, %v641_v11  ;;  %v1652_v11 = vld [vmem:[%s2139_s0 + $0x28] sm:$0xff]  }
 0x5a2   :  { %v638_v14 = vpop.xlane.xlu1 %637  ;;  %1588 = vmatpush3.bf16.msra.mxu0 %v1652_v11 }
 0x5a3   :  { %1698 = vpow2.f32 %v1424_v12  ;;  %v1423_v15 = vmul.f32 -1.442695, %v659_v13  ;;  %v658_v16 = vadd.f32 %v654_v4, %v638_v14  ;;  %1589 = vmatprep.subr.bf16.mxu0 %v1759_v49 }
 0x5a4   :  { %v635_v23 = vpop.xlane.xlu0 %634 }
 0x5a5   :  { %1700 = vpow2.f32 %v1423_v15  ;;  %v1422_v25 = vmul.f32 -1.442695, %v658_v16  ;;  %v657_v26 = vadd.f32 %v654_v4, %v635_v23 }
 0x5a6   :  { %v632_v28 = vpop.xlane.xlu1 %631 }
 0x5a7   :  { %1702 = vpow2.f32 %v1422_v25  ;;  %v1421_v29 = vmul.f32 -1.442695, %v657_v26  ;;  %v656_v31 = vadd.f32 %v654_v4, %v632_v28 }
 0x5a8   :  { %v629_v32 = vpop.xlane.xlu0 %628 }
 0x5a9   :  { %1704 = vpow2.f32 %v1421_v29  ;;  %v1420_v33 = vmul.f32 -1.442695, %v656_v31  ;;  %v655_v34 = vadd.f32 %v654_v4, %v629_v32  ;;  %v1654_v32 = vld [vmem:[#allocation2 + $0x10] sm:$0xff]  }
 0x5aa   :  { %v1695_v36 = vpop.eup %1694 }
 0x5ab   :  { %v693_v37 = vadd.f32 1.0, %v1695_v36  ;;  %1706 = vpow2.f32 %v1420_v33  ;;  %v1419_v42 = vmul.f32 -1.442695, %v655_v34  ;;  %v1655_v33 = vld [vmem:[#allocation2 + $0x8] sm:$0xff]   ;;  %v1657_v34 = vld [vmem:[%s2136_s3 + $0x40] sm:$0xff]  }
 0x5ad   :  { %1708 = vrcp.f32 %v693_v37 }
 0x5ae   :  { %v1697_v44 = vpop.eup %1696  ;;  %1710 = vpow2.f32 %v1419_v42 }
 0x5af   :  { %v694_v45 = vadd.f32 1.0, %v1697_v44 }
 0x5b0   :  { %v1699_v47 = vpop.eup %1698 }
 0x5b1   :  { %1712 = vrcp.f32 %v694_v45  ;;  %v692_v50 = vadd.f32 1.0, %v1699_v47 }
 0x5b2   :  { %v1701_v51 = vpop.eup %1700 }
 0x5b3   :  { %1714 = vrcp.f32 %v692_v50  ;;  %v691_v52 = vadd.f32 1.0, %v1701_v51  ;;  %v1658_v51 = vld [vmem:[%s2136_s3 + $0x48] sm:$0xff]  }
 0x5b4   :  { %v1703_v55 = vpop.eup %1702 }
 0x5b5   :  { %1716 = vrcp.f32 %v691_v52  ;;  %v690_v56 = vadd.f32 1.0, %v1703_v55  ;;  %v1659_v52 = vld [vmem:[%s2136_s3 + $0x50] sm:$0xff]   ;;  %v1660_v55 = vld [vmem:[%s2136_s3 + $0x58] sm:$0xff]  }
 0x5b6   :  { %v1705_v57 = vpop.eup %1704 }
 0x5b7   :  { %1718 = vrcp.f32 %v690_v56  ;;  %v689_v58 = vadd.f32 1.0, %v1705_v57 }
 0x5b8   :  { %v1707_v59 = vpop.eup %1706 }
 0x5b9   :  { %1720 = vrcp.f32 %v689_v58  ;;  %v688_v60 = vadd.f32 1.0, %v1707_v59 }
 0x5ba   :  { %v1709_v61 = vpop.eup %1708 }
 0x5bb   :  { %v1711_v62 = vpop.eup %1710  ;;  %1722 = vrcp.f32 %v688_v60  ;;  %743 = vperm.xlu0 %1632, %v1709_v61   ;;  %v2066_v60 = vld [vmem:[%s2137_s2 + $0x10] sm:$0xff] }
 0x5bc   :  { %v687_v63 = vadd.f32 1.0, %v1711_v62 }
 0x5be   :  { %v1713_v24 = vpop.eup %1712  ;;  %1724 = vrcp.f32 %v687_v63  ;;  %v1055_v63 = vrot.slane %v2066_v60, %v1861_v21 }
 0x5bf   :  { %748 = vperm.xlu1 %1633, %v1713_v24  }
 0x5c0   :  { %v1715_v0 = vpop.eup %1714 }
 0x5c1   :  { %738 = vperm.xlu0 %1632, %v1715_v0  }
 0x5c2   :  { %v1717_v30 = vpop.eup %1716 }
 0x5c3   :  { %733 = vperm.xlu1 %1633, %v1717_v30  }
 0x5c4   :  { %v1719_v20 = vpop.eup %1718 }
 0x5c5   :  { %728 = vperm.xlu0 %1632, %v1719_v20  }
 0x5c6   :  { %v1721_v17 = vpop.eup %1720 }
 0x5c7   :  { %723 = vperm.xlu1 %1633, %v1721_v17  }
 0x5c8   :  { %v1723_v27 = vpop.eup %1722 }
 0x5c9   :  { %718 = vperm.xlu0 %1632, %v1723_v27  }
 0x5cb   :  { %v1725_v35 = vpop.eup %1724 }
 0x5cc   :  { %713 = vperm.xlu1 %1633, %v1725_v35  }
 0x636   :  { %v744_v1 = vpop.permute.xlu0 %743 }
 0x637   :  { %v757_v3 = vmul.f32 %v1981_v43, %v744_v1 }
 0x63a   :  { %v749_v2 = vpop.permute.xlu1 %748 }
 0x63b   :  { %v758_v4 = vmul.f32 %v1987_v48, %v749_v2 }
 0x63c   :  { %v739_v19 = vpop.permute.xlu0 %738 }
 0x63d   :  { %v765_v22 = vpack.c.bf16 %v758_v4, %v757_v3  ;;  %v756_v6 = vmul.f32 %v739_v19, %v1992_v54 }
 0x63e   :  { %v734_v5 = vpop.permute.xlu1 %733 }
 0x63f   :  { %v755_v7 = vmul.f32 %v734_v5, %v1985_v46  ;;  %781 = vrot.lane.b32.xlu1 %v765_v22, %s1760_s27 }
 0x640   :  { %v729_v8 = vpop.permute.xlu0 %728 }
 0x641   :  { %v764_v9 = vpack.c.bf16 %v756_v6, %v755_v7  ;;  %v754_v43 = vmul.f32 %v1974_v40, %v729_v8 }
 0x642   :  { %v724_v10 = vpop.permute.xlu1 %723 }
 0x643   :  { %v753_v48 = vmul.f32 %v1970_v38, %v724_v10  ;;  %779 = vrot.lane.b32.xlu0 %v764_v9, %s1760_s27 }
 0x644   :  { %v719_v54 = vpop.permute.xlu0 %718 }
 0x645   :  { %v763_v12 = vpack.c.bf16 %v754_v43, %v753_v48  ;;  %v752_v13 = vmul.f32 %v719_v54, %v1976_v41  ;;  %v1653_v41 = vld [vmem:[%s2139_s0 + $0x20] sm:$0xff]  }
 0x646   :  { %1590 = vmatpush3.bf16.msra.mxu0 %v1653_v41 }
 0x647   :  { %v714_v46 = vpop.permute.xlu1 %713  ;;  %777 = vrot.lane.b32.xlu1 %v763_v12, %s1760_s27  ;;  %1609 = vmatprep.subr.bf16.mxu0 %v1759_v49 }
 0x648   :  { %v751_v14 = vmul.f32 %v714_v46, %v1972_v39  ;;  %v1651_v39 = vld [vmem:[%s2138_s4 + $0x8] sm:$0xff]  }
 0x64a   :  { %v762_v15 = vpack.c.bf16 %v752_v13, %v751_v14  ;;  %v1091_v13 = vrot.slane %v2066_v60, %v1894_v53 }
 0x64c   :  { %775 = vrot.lane.b32.xlu0 %v762_v15, %s1760_s27 }
 0x6b1   :  { %v782_v40 = vpop.permute.xlu1 %781 }
 0x6b2   :  { %1576 = vmatpush3.bf16.msra.mxu1 %v782_v40 }
 0x6b3   :  { %1577 = vmatprep.subr.bf16.mxu1 %v1759_v49 }
 0x6b5   :  { %v780_v38 = vpop.permute.xlu0 %779 }
 0x6b6   :  { %1578 = vmatpush3.bf16.msra.mxu1 %v780_v38 }
 0x6b7   :  { %1579 = vmatprep.subr.bf16.mxu1 %v1759_v49 }
 0x6b9   :  { %v778_v16 = vpop.permute.xlu1 %777 }
 0x6ba   :  { %1580 = vmatpush3.bf16.msra.mxu1 %v778_v16 }
 0x6bb   :  { %1581 = vmatprep.subr.bf16.mxu1 %v1759_v49 }
 0x6be   :  { %v776_v23 = vpop.permute.xlu0 %775 }
 0x6bf   :  { %1582 = vmatpush3.bf16.msra.mxu1 %v776_v23 }
 0x6c0   :  { %1595 = vmatprep.subr.bf16.mxu1 %v1654_v32 }
 0x6c2   :  { %1584 = vmatmul.mubr.msk.bf16.vlgmr.msra.gmra.mxu1 %vm349_vm4, %v1651_v39 }
 0x6c3   :  { %1596 = vmatpush3.bf16.msra.mxu1 %v1654_v32  ;;  %1601 = vmatprep.mubr.msk.bf16.mxu1 %vm91_vm1, %v1657_v34 }
 0x6c4   :  { %1597 = vmatprep.subr.bf16.mxu1 %v1655_v33 }
 0x6c7   :  { %1598 = vmatpush3.bf16.msra.mxu1 %v1655_v33 }
 0x782   :  { %v824_v25 = vpop.f32.mrf.mxu1 }
 0x784   :  { %v1585_v26 = vpop.f32.mrf.mxu1 }
 0x786   :  { %v827_v28 = vpop.f32.mrf.mxu1 }
 0x787   :  { %v833_v29 = vpack.c.bf16 %v827_v28, %v824_v25 }
 0x788   :  { %v1586_v31 = vpop.f32.mrf.mxu1 }
 0x789   :  { %1592 = vmatmul.mubr.msk.bf16.vlgmr.msra.gmra.mxu0 %vm189_vm2, %v833_v29 }
 0x78a   :  { %1617 = vmatprep.mubr.msk.bf16.mxu0 %vm1761_vm3, %v1759_v49 }
 0x849   :  { %v888_v36 = vpop.f32.mrf.mxu0 }
 0x84a   :  { %v1480_v37 = vpack.c.bf16 %v888_v36, %v888_v36 }
 0x84b   :  { %v1593_v42 = vpop.f32.mrf.mxu0 }
 0x84c   :  { %903 = vst.msk [vmem:[#allocation2] sm:$0xf] %vm28_vm0, %v1480_v37 }
 0x84d   :  { %v891_v44 = vpop.f32.mrf.mxu0 }
 0x84e   :  { %v1481_v45 = vpack.c.bf16 %v891_v44, %v891_v44 }
 0x84f   :  { %v1594_v47 = vpop.f32.mrf.mxu0 }
 0x850   :  { %904 = vst.msk [vmem:[#allocation2 + $0x4] sm:$0xf] %vm28_vm0, %v1481_v45 }
 0x857   :  { %v1656_v50 = vld [vmem:[#allocation2] sm:$0xff]  }
 0x858   :  { %1599 = vmatprep.subr.bf16.mxu1 %v1656_v50 }
 0x859   :  { %1600 = vmatpush3.bf16.msra.mxu1 %v1656_v50 }
 0x85c   :  { %1602 = vmatmul.mubr.msk.bf16.vlgmr.msra.gmra.mxu1 %vm91_vm1, %v1658_v51 }
 0x85d   :  { %1605 = vmatprep.mubr.msk.bf16.mxu1 %vm91_vm1, %v1659_v52 }
 0x864   :  { %1606 = vmatmul.mubr.msk.bf16.gmra.mxu1 %vm91_vm1, %v1660_v55 }
 0x91c   :  { %v2055_v56 = vpop.f32.mrf.mxu1 }
 0x91d   :  { %v1046_v21 = vmax.f32 %v2055_v56, 0.0 }
 0x91e   :  { %v2057_v57 = vpop.f32.mrf.mxu1 }
 0x91f   :  { %v1044_v8 = vmax.f32 %v2057_v57, 0.0  ;;  %v1058_v10 = vmul.f32 %v1055_v63, %v1046_v21 }
 0x920   :  { %v2059_v58 = vpop.f32.mrf.mxu1 }
 0x921   :  { %v1047_v1 = vmax.f32 %v2059_v58, 0.0  ;;  %v1070_v48 = vsel %vm189_vm2, %v1058_v10, 0.0  ;;  %v1056_v12 = vmul.f32 %v1055_v63, %v1044_v8 }
 0x922   :  { %v2061_v59 = vpop.f32.mrf.mxu1 }
 0x923   :  { %v1045_v5 = vmax.f32 %v2061_v59, 0.0  ;;  %v1059_v7 = vmul.f32 %v1055_v63, %v1047_v1  ;;  %v1064_v46 = vsel %vm189_vm2, %v1056_v12, 0.0 }
 0x924   :  { %v2068_v61 = vpop.f32.mrf.mxu1 }
 0x925   :  { %v1050_v62 = vmax.f32 %v2068_v61, 0.0  ;;  %v1073_v11 = vsel %vm189_vm2, %v1059_v7, 0.0  ;;  %v1057_v43 = vmul.f32 %v1055_v63, %v1045_v5 }
 0x926   :  { %v2073_v24 = vpop.f32.mrf.mxu1 }
 0x927   :  { %v1062_v0 = vmul.f32 %v1055_v63, %v1050_v62  ;;  %v1048_v20 = vmax.f32 %v2073_v24, 0.0  ;;  %v1067_v54 = vsel %vm189_vm2, %v1057_v43, 0.0 }
 0x928   :  { %v2075_v30 = vpop.f32.mrf.mxu1 }
 0x929   :  { %v1051_v17 = vmax.f32 %v2075_v30, 0.0  ;;  %v1082_v27 = vsel %vm189_vm2, %v1062_v0, 0.0  ;;  %v1060_v22 = vmul.f32 %v1055_v63, %v1048_v20 }
 0x92a   :  { %1083 = vadd.xlane.f32.xlu1 %v1082_v27  ;;  %v2080_v35 = vpop.f32.mrf.mxu1 }
 0x92b   :  { %v1049_v2 = vmax.f32 %v2080_v35, 0.0  ;;  %v1063_v3 = vmul.f32 %v1055_v63, %v1051_v17  ;;  %v1076_v9 = vsel %vm189_vm2, %v1060_v22, 0.0 }
 0x92d   :  { %v1085_v4 = vsel %vm189_vm2, %v1063_v3, 0.0  ;;  %v1061_v19 = vmul.f32 %v1055_v63, %v1049_v2 }
 0x92e   :  { %1086 = vadd.xlane.f32.xlu0 %v1085_v4 }
 0x92f   :  { %v1079_v6 = vsel %vm189_vm2, %v1061_v19, 0.0 }
 0x930   :  { %1080 = vadd.xlane.f32.xlu1 %v1079_v6 }
 0x932   :  { %1077 = vadd.xlane.f32.xlu0 %v1076_v9 }
 0x934   :  { %1074 = vadd.xlane.f32.xlu1 %v1073_v11 }
 0x936   :  { %1071 = vadd.xlane.f32.xlu0 %v1070_v48 }
 0x938   :  { %1068 = vadd.xlane.f32.xlu1 %v1067_v54 }
 0x93a   :  { %1065 = vadd.xlane.f32.xlu0 %v1064_v46 }
 0x9b3   :  { %v1084_v14 = vpop.xlane.xlu1 %1083 }
 0x9b4   :  { %v1098_v15 = vadd.f32 %v1091_v13, %v1084_v14 }
 0x9b6   :  { %v1470_v40 = vmul.f32 -1.442695, %v1098_v15 }
 0x9b7   :  { %v1087_v38 = vpop.xlane.xlu0 %1086 }
 0x9b8   :  { %1726 = vpow2.f32 %v1470_v40  ;;  %v1099_v16 = vadd.f32 %v1091_v13, %v1087_v38 }
 0x9b9   :  { %v1081_v23 = vpop.xlane.xlu1 %1080 }
 0x9ba   :  { %v1471_v39 = vmul.f32 -1.442695, %v1099_v16  ;;  %v1097_v41 = vadd.f32 %v1091_v13, %v1081_v23 }
 0x9bb   :  { %v1078_v25 = vpop.xlane.xlu0 %1077 }
 0x9bc   :  { %1728 = vpow2.f32 %v1471_v39  ;;  %v1469_v26 = vmul.f32 -1.442695, %v1097_v41  ;;  %v1096_v28 = vadd.f32 %v1091_v13, %v1078_v25 }
 0x9bd   :  { %v1075_v29 = vpop.xlane.xlu1 %1074 }
 0x9be   :  { %1730 = vpow2.f32 %v1469_v26  ;;  %v1468_v31 = vmul.f32 -1.442695, %v1096_v28  ;;  %v1095_v32 = vadd.f32 %v1091_v13, %v1075_v29 }
 0x9bf   :  { %v1072_v33 = vpop.xlane.xlu0 %1071 }
 0x9c0   :  { %1732 = vpow2.f32 %v1468_v31  ;;  %v1467_v53 = vmul.f32 -1.442695, %v1095_v32  ;;  %v1094_v34 = vadd.f32 %v1091_v13, %v1072_v33 }
 0x9c1   :  { %v1069_v36 = vpop.xlane.xlu1 %1068 }
 0x9c2   :  { %1734 = vpow2.f32 %v1467_v53  ;;  %v1466_v37 = vmul.f32 -1.442695, %v1094_v34  ;;  %v1093_v42 = vadd.f32 %v1091_v13, %v1069_v36 }
 0x9c3   :  { %v1066_v44 = vpop.xlane.xlu0 %1065 }
 0x9c4   :  { %1736 = vpow2.f32 %v1466_v37  ;;  %v1465_v45 = vmul.f32 -1.442695, %v1093_v42  ;;  %v1092_v47 = vadd.f32 %v1091_v13, %v1066_v44 }
 0x9c5   :  { %v1727_v50 = vpop.eup %1726 }
 0x9c6   :  { %v1130_v51 = vadd.f32 1.0, %v1727_v50  ;;  %1738 = vpow2.f32 %v1465_v45  ;;  %v1464_v52 = vmul.f32 -1.442695, %v1092_v47  ;;  %v1282_v47 = vld [vmem:[%s2140_s5 + $0x8] sm:$0xff] }
 0x9c8   :  { %1740 = vrcp.f32 %v1130_v51 }
 0x9c9   :  { %v1729_v55 = vpop.eup %1728  ;;  %1742 = vpow2.f32 %v1464_v52 }
 0x9ca   :  { %v1131_v62 = vadd.f32 1.0, %v1729_v55  ;;  %v1285_v55 = vld [vmem:[%s2141_s6] sm:$0xff] }
 0x9cb   :  { %v1731_v63 = vpop.eup %1730 }
 0x9cc   :  { %1744 = vrcp.f32 %v1131_v62  ;;  %v1129_v0 = vadd.f32 1.0, %v1731_v63 }
 0x9cd   :  { %v1733_v20 = vpop.eup %1732 }
 0x9ce   :  { %1746 = vrcp.f32 %v1129_v0  ;;  %v1128_v17 = vadd.f32 1.0, %v1733_v20 }
 0x9cf   :  { %v1735_v27 = vpop.eup %1734 }
 0x9d0   :  { %1748 = vrcp.f32 %v1128_v17  ;;  %v1127_v1 = vadd.f32 1.0, %v1735_v27 }
 0x9d1   :  { %v1737_v2 = vpop.eup %1736 }
 0x9d2   :  { %1750 = vrcp.f32 %v1127_v1  ;;  %v1126_v3 = vadd.f32 1.0, %v1737_v2 }
 0x9d3   :  { %v1739_v21 = vpop.eup %1738 }
 0x9d4   :  { %1752 = vrcp.f32 %v1126_v3  ;;  %v1125_v4 = vadd.f32 1.0, %v1739_v21 }
 0x9d5   :  { %v1741_v19 = vpop.eup %1740 }
 0x9d6   :  { %v1743_v22 = vpop.eup %1742  ;;  %1754 = vrcp.f32 %v1125_v4  ;;  %1180 = vperm.xlu0 %1632, %v1741_v19  }
 0x9d7   :  { %v1124_v5 = vadd.f32 1.0, %v1743_v22 }
 0x9d9   :  { %v1745_v6 = vpop.eup %1744  ;;  %1756 = vrcp.f32 %v1124_v5 }
 0x9da   :  { %1185 = vperm.xlu1 %1633, %v1745_v6  }
 0x9db   :  { %v1747_v7 = vpop.eup %1746 }
 0x9dc   :  { %1175 = vperm.xlu0 %1632, %v1747_v7  }
 0x9dd   :  { %v1749_v8 = vpop.eup %1748 }
 0x9de   :  { %1170 = vperm.xlu1 %1633, %v1749_v8  }
 0x9df   :  { %v1751_v9 = vpop.eup %1750 }
 0x9e0   :  { %1165 = vperm.xlu0 %1632, %v1751_v9  }
 0x9e1   :  { %v1753_v10 = vpop.eup %1752 }
 0x9e2   :  { %1160 = vperm.xlu1 %1633, %v1753_v10  }
 0x9e3   :  { %v1755_v11 = vpop.eup %1754 }
 0x9e4   :  { %1155 = vperm.xlu0 %1632, %v1755_v11  }
 0x9e6   :  { %v1757_v43 = vpop.eup %1756 }
 0x9e7   :  { %1150 = vperm.xlu1 %1633, %v1757_v43  }
 0xa51   :  { %v1181_v48 = vpop.permute.xlu0 %1180 }
 0xa52   :  { %v1194_v54 = vmul.f32 %v2068_v61, %v1181_v48 }
 0xa55   :  { %v1186_v12 = vpop.permute.xlu1 %1185 }
 0xa56   :  { %v1195_v46 = vmul.f32 %v2075_v30, %v1186_v12 }
 0xa57   :  { %v1176_v13 = vpop.permute.xlu0 %1175 }
 0xa58   :  { %v1202_v14 = vpack.c.bf16 %v1195_v46, %v1194_v54  ;;  %v1193_v40 = vmul.f32 %v1176_v13, %v2080_v35 }
 0xa59   :  { %v1171_v15 = vpop.permute.xlu1 %1170 }
 0xa5a   :  { %v1192_v38 = vmul.f32 %v1171_v15, %v2073_v24  ;;  %1218 = vrot.lane.b32.xlu1 %v1202_v14, %s1760_s27 }
 0xa5b   :  { %v1166_v16 = vpop.permute.xlu0 %1165 }
 0xa5c   :  { %v1201_v23 = vpack.c.bf16 %v1193_v40, %v1192_v38  ;;  %v1191_v41 = vmul.f32 %v2059_v58, %v1166_v16 }
 0xa5d   :  { %v1161_v39 = vpop.permute.xlu1 %1160 }
 0xa5e   :  { %v1190_v25 = vmul.f32 %v2055_v56, %v1161_v39  ;;  %1216 = vrot.lane.b32.xlu0 %v1201_v23, %s1760_s27 }
 0xa5f   :  { %v1156_v30 = vpop.permute.xlu0 %1155 }
 0xa60   :  { %v1200_v61 = vpack.c.bf16 %v1191_v41, %v1190_v25  ;;  %v1189_v35 = vmul.f32 %v1156_v30, %v2061_v59  ;;  %v1271_v59 = vsub.s32 2, %v1854_v18  ;;  %v1281_v18 = vld [vmem:[%s2140_s5] sm:$0xff] }
 0xa62   :  { %v1151_v26 = vpop.permute.xlu1 %1150  ;;  %1214 = vrot.lane.b32.xlu1 %v1200_v61, %s1760_s27  ;;  %v1272_v32 = vrot.slane %v2066_v60, %v1271_v59 }
 0xa63   :  { %v1188_v24 = vmul.f32 %v1151_v26, %v2057_v57  ;;  %v1661_v57 = vld [vmem:[%s2138_s4 + $0x10] sm:$0xff]  }
 0xa65   :  { %v1199_v28 = vpack.c.bf16 %v1189_v35, %v1188_v24 }
 0xa67   :  { %1212 = vrot.lane.b32.xlu0 %v1199_v28, %s1760_s27 }
 0xacc   :  { %v1219_v29 = vpop.permute.xlu1 %1218 }
 0xacd   :  { %1610 = vmatpush3.bf16.msra.mxu0 %v1219_v29 }
 0xace   :  { %1611 = vmatprep.subr.bf16.mxu0 %v1759_v49 }
 0xad0   :  { %v1217_v58 = vpop.permute.xlu0 %1216 }
 0xad1   :  { %1612 = vmatpush3.bf16.msra.mxu0 %v1217_v58 }
 0xad2   :  { %1613 = vmatprep.subr.bf16.mxu0 %v1759_v49 }
 0xad4   :  { %v1215_v56 = vpop.permute.xlu1 %1214 }
 0xad5   :  { %1614 = vmatpush3.bf16.msra.mxu0 %v1215_v56 }
 0xad6   :  { %1615 = vmatprep.subr.bf16.mxu0 %v1759_v49 }
 0xad9   :  { %v1213_v31 = vpop.permute.xlu0 %1212 }
 0xada   :  { %1616 = vmatpush3.bf16.msra.mxu0 %v1213_v31 }
 0xadb   :  { %1621 = vmatprep.subr.mxu0 %v1759_v49 }
 0xadd   :  { %1618 = vmatmul.mubr.msk.bf16.vlgmr.msra.gmra.mxu0 %vm349_vm4, %v1661_v57 }
 0xade   :  { %1625 = vmatprep.mubr.msk.f32.mxu0 %vm1761_vm3, %v1759_v49 }
 0xb9d   :  { %v1261_v33 = vpop.f32.mrf.mxu0 }
 0xb9e   :  { %v1273_v53 = vmul.f32 %v1272_v32, %v1261_v33 }
 0xb9f   :  { %v1619_v34 = vpop.f32.mrf.mxu0 }
 0xba0   :  { %v1275_v36 = vsel %vm189_vm2, %v1273_v53, 0.0 }
 0xba1   :  { %1276 = vadd.xlane.f32.xlu0 %v1275_v36  ;;  %v1264_v37 = vpop.f32.mrf.mxu0 }
 0xba2   :  { %v1274_v42 = vmul.f32 %v1272_v32, %v1264_v37 }
 0xba3   :  { %v1620_v44 = vpop.f32.mrf.mxu0 }
 0xba4   :  { %v1278_v45 = vsel %vm189_vm2, %v1274_v42, 0.0 }
 0xba5   :  { %1279 = vadd.xlane.f32.xlu1 %v1278_v45 }
 0xc2a   :  { %v1277_v60 = vpop.xlane.xlu0 %1276 }
 0xc2b   :  { %v1283_v52 = vmul.f32 %v1281_v18, %v1277_v60 }
 0xc2e   :  { %v1280_v50 = vpop.xlane.xlu1 %1279 }
 0xc2f   :  { %v1284_v51 = vmul.f32 %v1282_v47, %v1280_v50 }
 0xc31   :  { %1622 = vmatpush3.msra.mxu0 %v1284_v51 }
 0xc32   :  { %1623 = vmatprep.subr.mxu0 %v1759_v49 }
 0xc33   :  { %1624 = vmatpush3.msra.mxu0 %v1283_v52 }
 0xc34   :  { %1626 = vmatmul.mubr.msk.f32.vlgmr.msra.gmra.mxu0 %vm1286_vm5, %v1285_v55 }
 0xcf4   :  { %v1356_v62 = vpop.f32.mrf.mxu0 }
 0xcf5   :  { %1360 = vst [vmem:[%s2142_s7] sm:$0xff] %v1356_v62 }
 0xcf6   :  { %v1627_v63 = vpop.f32.mrf.mxu0 }

</bundles_post_ra>
